<compile_context>
chip_gen: v5e
topology: v5e:2x2
jax: 0.10.0
libtpu: 0.0.40
codegen_flags: <defaults>
</compile_context>

<pallas_src>
import functools

import jax
import jax.numpy as jnp
from jax.experimental import pallas as pl
from jax.experimental.pallas import tpu as pltpu

LANES = 128
CHUNK_ROWS = 2048   # (2048, 128) f32 block = 1 MiB per input per pipeline buffer
NUM_SPLITS = 2      # leading "parallel" grid axis (2 TCs on v7x; harmless on 1-TC chips)


def _dice_sums_kernel(o_ref, t_ref, inter_ref, sum_ref, *,
                      rows, chunk_rows, bps, needs_mask):
    """Accumulates per-split elementwise partials of o*t and o+t."""
    i = pl.program_id(0)  # split index ("parallel")
    k = pl.program_id(1)  # chunk index within split ("arbitrary" reduction axis)

    @pl.when(k == 0)
    def _():
        inter_ref[...] = jnp.zeros_like(inter_ref)
        sum_ref[...] = jnp.zeros_like(sum_ref)

    o = o_ref[...].astype(jnp.float32)
    t = t_ref[...].astype(jnp.float32)

    if needs_mask:
        # Logical (unclamped) block index -> zero out rows past the real data.
        row0 = (i * bps + k) * chunk_rows
        row_ids = row0 + jax.lax.broadcasted_iota(jnp.int32, (chunk_rows, LANES), 0)
        valid = row_ids < rows
        o = jnp.where(valid, o, 0.0)
        t = jnp.where(valid, t, 0.0)

    # Pure-VPU accumulation into the resident output blocks.
    inter_ref[0] += o * t
    sum_ref[0] += o + t


def dice_pallas(output, target, smooth=1.0, class_id=1):
    """Dice metric. `class_id` is unused (matches the reference forward)."""
    del class_id
    smooth = float(smooth)

    o_flat = output.reshape(-1)
    t_flat = target.reshape(-1)
    n = o_flat.shape[0]

    rows = n // LANES
    main = rows * LANES
    tail = n - main

    # Tiny (<128-element) tail: handled with plain JAX on a small slice instead of
    # padding/copying the full arrays in HBM.
    if tail:
        o_t = o_flat[main:].astype(jnp.float32)
        t_t = t_flat[main:].astype(jnp.float32)
        tail_inter = jnp.sum(o_t * t_t)
        tail_sum = jnp.sum(o_t) + jnp.sum(t_t)
    else:
        tail_inter = 0.0
        tail_sum = 0.0

    if rows == 0:
        return (2.0 * tail_inter + smooth) / (tail_sum + smooth)

    o2d = (o_flat if tail == 0 else o_flat[:main]).reshape(rows, LANES)
    t2d = (t_flat if tail == 0 else t_flat[:main]).reshape(rows, LANES)

    chunk_rows = min(CHUNK_ROWS, rows)
    nblocks = pl.cdiv(rows, chunk_rows)
    num_splits = NUM_SPLITS if nblocks >= NUM_SPLITS else 1
    bps = pl.cdiv(nblocks, num_splits)          # blocks per split
    needs_mask = (num_splits * bps * chunk_rows) != rows

    def in_map(i, k):
        # Clamp so the DMA always targets a valid block; the in-kernel mask
        # (based on the unclamped logical index) zeroes any duplicated reads.
        return (jnp.minimum(i * bps + k, nblocks - 1), 0)

    def out_map(i, k):
        return (i, 0, 0)

    kernel = functools.partial(
        _dice_sums_kernel,
        rows=rows, chunk_rows=chunk_rows, bps=bps, needs_mask=needs_mask)

    acc_shape = jax.ShapeDtypeStruct((num_splits, chunk_rows, LANES), jnp.float32)

    inter_acc, sum_acc = pl.pallas_call(
        kernel,
        out_shape=(acc_shape, acc_shape),
        grid_spec=pltpu.PrefetchScalarGridSpec(
            num_scalar_prefetch=0,
            grid=(num_splits, bps),
            in_specs=[
                pl.BlockSpec((chunk_rows, LANES), in_map),
                pl.BlockSpec((chunk_rows, LANES), in_map),
            ],
            out_specs=[
                pl.BlockSpec((1, chunk_rows, LANES), out_map),
                pl.BlockSpec((1, chunk_rows, LANES), out_map),
            ],
        ),
        compiler_params=pltpu.CompilerParams(
            dimension_semantics=("parallel", "arbitrary"),
        ),
    )(o2d, t2d)

    # Single cross-lane reduction + divide, outside the hot loop.
    inter = jnp.sum(inter_acc) + tail_inter
    total = jnp.sum(sum_acc) + tail_sum
    return (2.0 * inter + smooth) / (total + smooth)


def dice_ref(output, target, smooth=1.0):
    o = output.reshape(-1).astype(jnp.float32)
    t = target.reshape(-1).astype(jnp.float32)
    inter = jnp.sum(o * t)
    return (2.0 * inter + smooth) / (jnp.sum(o) + jnp.sum(t) + smooth)


if __name__ == "__main__":
    key = jax.random.PRNGKey(0)

    cases = [
        (2, 4, 16, 16),     # basic NCHW case
        (2, 4, 250, 320),   # multi-block, 2-way split, masked partial block
        (1, 3, 17, 19),     # sub-lane tail handled in the wrapper
    ]
    for idx, shape in enumerate(cases):
        k1, k2 = jax.random.split(jax.random.fold_in(key, idx))
        output = jax.random.uniform(k1, shape, dtype=jnp.float32)
        target = (jax.random.uniform(k2, shape) > 0.5).astype(jnp.float32)

        val = dice_pallas(output, target, smooth=1.0)
        jax.block_until_ready(val)

        ref = dice_ref(output, target, smooth=1.0)
        assert jnp.allclose(val, ref, rtol=1e-5, atol=1e-6), (shape, val, ref)

    print("KERNEL_OK")
</pallas_src>

<mosaic_0001>
module attributes {stable_mosaic.version = 11 : i64} {
  func.func @_dice_sums_kernel(%arg0: i32, %arg1: i32, %arg2: memref<16x128xf32, #tpu.memory_space<vmem>>, %arg3: memref<16x128xf32, #tpu.memory_space<vmem>>, %arg4: memref<1x16x128xf32, #tpu.memory_space<vmem>>, %arg5: memref<1x16x128xf32, #tpu.memory_space<vmem>>) attributes {dimension_semantics = [#tpu.dimension_semantics<parallel>, #tpu.dimension_semantics<arbitrary>], iteration_bounds = array<i64: 1, 1>, scalar_prefetch = 0 : i64, scratch_operands = 0 : i64, tpu.core_type = #tpu.core_type<tc>, window_params = [{transform_indices = @transform_0, window_bounds = array<i64: 16, 128>}, {transform_indices = @transform_1, window_bounds = array<i64: 16, 128>}, {transform_indices = @transform_2, window_bounds = array<i64: 1, 16, 128>}, {transform_indices = @transform_3, window_bounds = array<i64: 1, 16, 128>}]} {
    %c0_i32 = arith.constant 0 : i32
    %0 = arith.cmpi eq, %arg1, %c0_i32 : i32
    %1 = arith.extui %0 : i1 to i32
    %c0_i32_0 = arith.constant 0 : i32
    %2 = arith.cmpi ne, %1, %c0_i32_0 : i32
    scf.if %2 {
      %cst = arith.constant 0.000000e+00 : f32
      %19 = vector.broadcast %cst : f32 to vector<1x16x128xf32>
      %c0_16 = arith.constant 0 : index
      %c0_17 = arith.constant 0 : index
      %c0_18 = arith.constant 0 : index
      %20 = vector.load %arg4[%c0_16, %c0_17, %c0_18] : memref<1x16x128xf32, #tpu.memory_space<vmem>>, vector<1x16x128xf32>
      tpu.vector_store %arg4[%c0_16, %c0_17, %c0_18], %19 {strides = array<i32>} : memref<1x16x128xf32, #tpu.memory_space<vmem>>, vector<1x16x128xf32>,
      %cst_19 = arith.constant 0.000000e+00 : f32
      %21 = vector.broadcast %cst_19 : f32 to vector<1x16x128xf32>
      %c0_20 = arith.constant 0 : index
      %c0_21 = arith.constant 0 : index
      %c0_22 = arith.constant 0 : index
      %22 = vector.load %arg5[%c0_20, %c0_21, %c0_22] : memref<1x16x128xf32, #tpu.memory_space<vmem>>, vector<1x16x128xf32>
      tpu.vector_store %arg5[%c0_20, %c0_21, %c0_22], %21 {strides = array<i32>} : memref<1x16x128xf32, #tpu.memory_space<vmem>>, vector<1x16x128xf32>,
    } else {
    }
    %c0 = arith.constant 0 : index
    %c0_1 = arith.constant 0 : index
    %3 = vector.load %arg2[%c0, %c0_1] : memref<16x128xf32, #tpu.memory_space<vmem>>, vector<16x128xf32>
    %c0_2 = arith.constant 0 : index
    %c0_3 = arith.constant 0 : index
    %4 = vector.load %arg3[%c0_2, %c0_3] : memref<16x128xf32, #tpu.memory_space<vmem>>, vector<16x128xf32>
    %c0_4 = arith.constant 0 : index
    %c0_5 = arith.constant 0 : index
    %c0_6 = arith.constant 0 : index
    %5 = vector.load %arg4[%c0_4, %c0_5, %c0_6] : memref<1x16x128xf32, #tpu.memory_space<vmem>>, vector<1x16x128xf32>
    %6 = vector.shape_cast %5 : vector<1x16x128xf32> to vector<16x128xf32>
    %7 = arith.mulf %3, %4 : vector<16x128xf32>
    %8 = arith.addf %6, %7 : vector<16x128xf32>
    %c0_7 = arith.constant 0 : index
    %c0_8 = arith.constant 0 : index
    %c0_9 = arith.constant 0 : index
    %9 = vector.load %arg4[%c0_7, %c0_8, %c0_9] : memref<1x16x128xf32, #tpu.memory_space<vmem>>, vector<1x16x128xf32>
    %10 = vector.shape_cast %9 : vector<1x16x128xf32> to vector<16x128xf32>
    %11 = vector.shape_cast %8 : vector<16x128xf32> to vector<1x16x128xf32>
    tpu.vector_store %arg4[%c0_7, %c0_8, %c0_9], %11 {strides = array<i32>} : memref<1x16x128xf32, #tpu.memory_space<vmem>>, vector<1x16x128xf32>,
    %c0_10 = arith.constant 0 : index
    %c0_11 = arith.constant 0 : index
    %c0_12 = arith.constant 0 : index
    %12 = vector.load %arg5[%c0_10, %c0_11, %c0_12] : memref<1x16x128xf32, #tpu.memory_space<vmem>>, vector<1x16x128xf32>
    %13 = vector.shape_cast %12 : vector<1x16x128xf32> to vector<16x128xf32>
    %14 = arith.addf %3, %4 : vector<16x128xf32>
    %15 = arith.addf %13, %14 : vector<16x128xf32>
    %c0_13 = arith.constant 0 : index
    %c0_14 = arith.constant 0 : index
    %c0_15 = arith.constant 0 : index
    %16 = vector.load %arg5[%c0_13, %c0_14, %c0_15] : memref<1x16x128xf32, #tpu.memory_space<vmem>>, vector<1x16x128xf32>
    %17 = vector.shape_cast %16 : vector<1x16x128xf32> to vector<16x128xf32>
    %18 = vector.shape_cast %15 : vector<16x128xf32> to vector<1x16x128xf32>
    tpu.vector_store %arg5[%c0_13, %c0_14, %c0_15], %18 {strides = array<i32>} : memref<1x16x128xf32, #tpu.memory_space<vmem>>, vector<1x16x128xf32>,
    return
  }
  func.func @transform_0(%arg0: i32, %arg1: i32) -> (i32, i32) {
    %c1_i32 = arith.constant 1 : i32
    %0 = arith.muli %arg0, %c1_i32 : i32
    %1 = arith.addi %0, %arg1 : i32
    %c0_i32 = arith.constant 0 : i32
    %2 = arith.minsi %1, %c0_i32 : i32
    %c0_i32_0 = arith.constant 0 : i32
    %c0_i32_1 = arith.constant 0 : i32
    return %2, %c0_i32_0 : i32, i32
  }
  func.func @transform_1(%arg0: i32, %arg1: i32) -> (i32, i32) {
    %c1_i32 = arith.constant 1 : i32
    %0 = arith.muli %arg0, %c1_i32 : i32
    %1 = arith.addi %0, %arg1 : i32
    %c0_i32 = arith.constant 0 : i32
    %2 = arith.minsi %1, %c0_i32 : i32
    %c0_i32_0 = arith.constant 0 : i32
    %c0_i32_1 = arith.constant 0 : i32
    return %2, %c0_i32_0 : i32, i32
  }
  func.func @transform_2(%arg0: i32, %arg1: i32) -> (i32, i32, i32) {
    %c0_i32 = arith.constant 0 : i32
    %c0_i32_0 = arith.constant 0 : i32
    %c0_i32_1 = arith.constant 0 : i32
    return %arg0, %c0_i32, %c0_i32_0 : i32, i32, i32
  }
  func.func @transform_3(%arg0: i32, %arg1: i32) -> (i32, i32, i32) {
    %c0_i32 = arith.constant 0 : i32
    %c0_i32_0 = arith.constant 0 : i32
    %c0_i32_1 = arith.constant 0 : i32
    return %arg0, %c0_i32, %c0_i32_0 : i32, i32, i32
  }
}

</mosaic_0001>

<bundles_post_ra>
// kernel: tpu_custom_call.1
= control target key start
LH: loop header
LB: loop body
LE: loop exit
PB: predicated region body
PF: predicated region fallthrough
CT: control target
= control target key end

     0   :  { %9 = vsyncpa [#allocation3], 0  ;;  %s298_s0 = inlined_call_operand.hbm [shape: f32[16,128], index: 0, kind: input, shape index: {}]   ;;  %s299_s1 = inlined_call_operand.hbm [shape: f32[16,128], index: 1, kind: input, shape index: {}]   ;;  %s300_s2 = inlined_call_operand.hbm [shape: f32[1,16,128], index: 2, kind: output, shape index: {0}]   ;;  %s301_s3 = inlined_call_operand.hbm [shape: f32[1,16,128], index: 3, kind: output, shape index: {1}]  }
   0x1   :  { %10 = vsyncpa [#allocation6], 0 }
   0x2   :  { %11 = vsyncpa [#allocation4], 0 }
   0x3   :  { %12 = vsyncpa [#allocation9], 0  ;;  %s23_s14 = sshll.u32 %s298_s0, 4  ;;  %s248_s15 = smov [#allocation2]   ;;  %s24_s14 = int_to_ptr.hbm [resolvable:$true] %s23_s14 }
   0x4   :  { %s25_s16 = sshll.u32 %s248_s15, 4  ;;  %s42_s19 = sshll.u32 %s299_s1, 4  ;;  %s26_s16 = int_to_ptr.vmem [resolvable:$true] %s25_s16  ;;  %s43_s19 = int_to_ptr.hbm [resolvable:$true] %s42_s19 }
   0x5   :  { %s249_s20 = smov 128   ;;  %s250_s21 = smov 8  }
   0x6   :  { %31 = dma.hbm_to_vmem [thread:$0]  %s24_s14, 256, %s26_s16, [#allocation3], %s249_s20, %s249_s20, %s250_s21  }
   0x7   :  { %s251_s22 = smov [#allocation5]  }
   0x8   :  { %s44_s23 = sshll.u32 %s251_s22, 4  ;;  %s45_s23 = int_to_ptr.vmem [resolvable:$true] %s44_s23 }
   0x9   :  { %50 = dma.hbm_to_vmem [thread:$0]  %s43_s19, 256, %s45_s23, [#allocation6], %s249_s20, %s249_s20, %s250_s21  }
   0xa   :  { %240 = dma.done.wait [#allocation3], 256  }
   0xb   :  { %241 = vsyncadd [#allocation3], 4294967040 }
   0xc   :  { %242 = dma.done.wait [#allocation6], 256  }
   0xd   :  { %243 = vsyncadd [#allocation6], 4294967040  ;;  %v75_v0 = vld [vmem:[#allocation2] sm:$0xff]  ;;  %v77_v1 = vld [vmem:[#allocation5] sm:$0xff]  ;;  %s252_s0 = smov [#allocation7]   ;;  %s101_s26 = sshll.u32 %s300_s2, 4  ;;  %s102_s26 = int_to_ptr.hbm [resolvable:$true] %s101_s26 }
   0xe   :  { %v76_v2 = vld [vmem:[#allocation2 + $0x8] sm:$0xff]  ;;  %v81_v3 = vmul.f32 %v77_v1, %v75_v0  ;;  %v78_v4 = vld [vmem:[#allocation5 + $0x8] sm:$0xff]  ;;  %v89_v5 = vadd.f32 %v77_v1, %v75_v0  ;;  %s99_s1 = sshll.u32 %s252_s0, 4  ;;  %s253_s27 = smov [#allocation8]   ;;  %s100_s1 = int_to_ptr.vmem [resolvable:$true] %s99_s1 }
   0xf   :  { %v82_v6 = vmul.f32 %v78_v4, %v76_v2  ;;  %v90_v7 = vadd.f32 %v78_v4, %v76_v2  ;;  %s112_s28 = sshll.u32 %s253_s27, 4  ;;  %s114_s4 = sshll.u32 %s301_s3, 4  ;;  %s113_s28 = int_to_ptr.vmem [resolvable:$true] %s112_s28  ;;  %s115_s4 = int_to_ptr.hbm [resolvable:$true] %s114_s4 }
  0x10   :  { %85 = vst [vmem:[#allocation7] sm:$0xff] %v81_v3 }
  0x11   :  { %86 = vst [vmem:[#allocation7 + $0x8] sm:$0xff] %v82_v6 }
  0x12   :  { %93 = vst [vmem:[#allocation8] sm:$0xff] %v89_v5  ;;  %107 = dma.vmem_to_hbm [thread:$0]  %s100_s1, 256, %s102_s26, [#allocation4], %s249_s20, %s249_s20, %s250_s21  }
  0x13   :  { %94 = vst [vmem:[#allocation8 + $0x8] sm:$0xff] %v90_v7 }
  0x14   :  { %120 = dma.vmem_to_hbm [thread:$0]  %s113_s28, 256, %s115_s4, [#allocation9], %s249_s20, %s249_s20, %s250_s21  }
  0x15   :  { %244 = dma.done.wait [#allocation4], 256  }
  0x16   :  { %245 = vsyncadd [#allocation4], 4294967040 }
  0x17   :  { %246 = dma.done.wait [#allocation9], 256  }
  0x18   :  { %247 = vsyncadd [#allocation9], 4294967040 }
  0x19   :  { %129 = vsyncpa [#allocation3], 1 }
  0x1a   :  { %130 = vsyncpa [#allocation6], 1 }
  0x1b   :  { %131 = vsyncpa [#allocation4], 1 }
  0x1c   :  { %132 = vsyncpa [#allocation9], 1 }

</bundles_post_ra>
